<compile_context>
chip_gen: v7x
topology: tpu7x:2x2x1
jax: 0.10.0
libtpu: 0.0.40
codegen_flags: <defaults>
</compile_context>

<pallas_src>
import math

import jax
import jax.numpy as jnp
from jax.experimental import pallas as pl
from jax.experimental.pallas import tpu as pltpu


# ------------------------------- Pallas kernel -------------------------------

def _make_mha_kernel(Bt, T, D, num_heads, with_attn):
    hd = D // num_heads
    M = Bt * T

    def body(x_ref, wqkv_ref, wproj_ref, bproj_ref, o_ref, attn_ref):
        # x_ref:(Bt,T,D) bf16   wqkv_ref:(D,3D) bf16 (Q cols pre-scaled 1/sqrt(hd))
        # wproj_ref:(H,hd,D) bf16   bproj_ref:(1,D) f32
        # o_ref:(Bt,T,D) f32    attn_ref:(Bt,T,H*T) f32 or None
        x2 = x_ref[...].reshape(M, D)                       # leading-dim merge: free

        # One (M, D) @ (D, 3D) MXU op for the whole block (qkv_bias=False).
        qkv = jnp.dot(x2, wqkv_ref[...],
                      preferred_element_type=jnp.float32)   # (M, 3D) f32
        qkv = qkv.astype(jnp.bfloat16).reshape(Bt, T, 3 * D)

        out_acc = jnp.zeros((M, D), jnp.float32)
        attn_parts = []
        for h in range(num_heads):                          # static unroll, H small
            lo = h * hd
            q_h = qkv[:, :, lo:lo + hd]                     # (Bt,T,hd) bf16, pre-scaled
            k_h = qkv[:, :, D + lo:D + lo + hd]             # (Bt,T,hd) bf16
            v_h = qkv[:, :, 2 * D + lo:2 * D + lo + hd]     # (Bt,T,hd) bf16

            # scores; 1/sqrt(hd) already folded into the Q weights
            s = jnp.einsum('bqd,bkd->bqk', q_h, k_h,
                           preferred_element_type=jnp.float32)        # (Bt,T,T) f32

            # numerically-stable softmax in f32; reciprocal goes to the EUP slot
            m = jnp.max(s, axis=-1, keepdims=True)
            p = jnp.exp(s - m)
            inv = pl.reciprocal(jnp.sum(p, axis=-1, keepdims=True), approx=True)
            attn_h = p * inv                                           # (Bt,T,T) f32
            if attn_ref is not None:
                attn_parts.append(attn_h)

            w_h = jnp.einsum('bqk,bkd->bqd', attn_h.astype(jnp.bfloat16), v_h,
                             preferred_element_type=jnp.float32)       # (Bt,T,hd) f32

            # head-concat + output projection folded into an accumulated matmul:
            #   weighted @ Wproj == sum_h  w_h @ Wproj[h]
            out_acc = out_acc + jnp.dot(
                w_h.reshape(M, hd).astype(jnp.bfloat16), wproj_ref[h],
                preferred_element_type=jnp.float32)                    # (M, D)

        o_ref[...] = (out_acc + bproj_ref[...]).reshape(Bt, T, D)

        if attn_ref is not None:
            # one lane-dense (H*T-lane) store instead of H masked T-lane stores
            attn_ref[...] = jnp.concatenate(attn_parts, axis=-1)       # (Bt,T,H*T)

    if with_attn:
        def kernel(x_ref, wqkv_ref, wproj_ref, bproj_ref, o_ref, attn_ref):
            body(x_ref, wqkv_ref, wproj_ref, bproj_ref, o_ref, attn_ref)
    else:
        def kernel(x_ref, wqkv_ref, wproj_ref, bproj_ref, o_ref):
            body(x_ref, wqkv_ref, wproj_ref, bproj_ref, o_ref, None)
    return kernel


# ------------------------------ weight preparation ----------------------------

def prepare_weights(qkv_w, proj_w, proj_b, num_heads):
    """torch-layout (out,in) weights -> kernel-ready bf16 layouts (runs once)."""
    D = proj_w.shape[0]
    assert D % num_heads == 0
    hd = D // num_heads
    wqkv = jnp.asarray(qkv_w.T, jnp.float32)                           # (D, 3D)
    # fold 1/sqrt(hd) into the Q output columns (first D cols of the 3D axis)
    wqkv = wqkv.at[:, :D].multiply(1.0 / math.sqrt(hd)).astype(jnp.bfloat16)
    wproj = (jnp.asarray(proj_w.T, jnp.float32)                        # (D, D) in,out
             .reshape(num_heads, hd, D).astype(jnp.bfloat16))          # (H, hd, D)
    bproj = jnp.asarray(proj_b, jnp.float32).reshape(1, D)             # (1, D)
    return wqkv, wproj, bproj


# --------------------------------- wrapper ------------------------------------

def _pick_block_batch(B, T, target_rows=256):
    """Largest divisor of B with Bt*T <= target_rows, preferring >= 2 grid steps
    so both v7x TensorCores get work (single-step collapse only if unavoidable)."""
    cap = max(1, target_rows // T)
    divisors = [d for d in range(1, B + 1) if B % d == 0 and d <= cap]
    if not divisors:
        return 1
    multi = [d for d in divisors if B // d >= 2]
    return max(multi) if multi else max(divisors)


def mha_forward(x, wqkv, wproj, bproj, *, num_heads, return_attn=True):
    """x:(B,T,D) -> (out:(B,T,D) f32, attn:(B,H,T,T) f32)  (attn optional)."""
    B, T, D = x.shape
    H = num_heads
    hd = D // H
    Bt = _pick_block_batch(B, T)
    x = x.astype(jnp.bfloat16)

    kernel = _make_mha_kernel(Bt, T, D, H, with_attn=return_attn)

    flops = 2 * B * T * D * 3 * D + 4 * B * H * T * T * hd + 2 * B * T * D * D
    transcendentals = B * H * T * T
    bytes_accessed = (B * T * D * 2 + wqkv.size * 2 + wproj.size * 2 + bproj.size * 4
                      + B * T * D * 4 + (B * H * T * T * 4 if return_attn else 0))

    out_spec = pl.BlockSpec((Bt, T, D), lambda b: (b, 0, 0))
    out_struct = jax.ShapeDtypeStruct((B, T, D), jnp.float32)
    if return_attn:
        out_specs = (out_spec, pl.BlockSpec((Bt, T, H * T), lambda b: (b, 0, 0)))
        out_shapes = (out_struct, jax.ShapeDtypeStruct((B, T, H * T), jnp.float32))
    else:
        out_specs = out_spec
        out_shapes = out_struct

    res = pl.pallas_call(
        kernel,
        grid=(B // Bt,),
        in_specs=[
            pl.BlockSpec((Bt, T, D), lambda b: (b, 0, 0)),
            pl.BlockSpec((D, 3 * D), lambda b: (0, 0)),
            pl.BlockSpec((H, hd, D), lambda b: (0, 0, 0)),
            pl.BlockSpec((1, D), lambda b: (0, 0)),
        ],
        out_specs=out_specs,
        out_shape=out_shapes,
        compiler_params=pltpu.CompilerParams(dimension_semantics=("parallel",)),
        cost_estimate=pl.CostEstimate(flops=flops,
                                      transcendentals=transcendentals,
                                      bytes_accessed=bytes_accessed),
    )(x, wqkv, wproj, bproj)

    if not return_attn:
        return res
    out, attn_wide = res
    # (B,T,H*T) -> (B,H,T,T): cheap wrapper-side layout plumbing (XLA transpose)
    attn = jnp.transpose(attn_wide.reshape(B, T, H, T), (0, 2, 1, 3))
    return out, attn


mha_forward_jit = jax.jit(mha_forward, static_argnames=("num_heads", "return_attn"))


# ------------------------- pure-JAX reference (check) --------------------------

def mha_reference(x, qkv_w, proj_w, proj_b, num_heads):
    """Mirrors the PyTorch module (torch-layout (out,in) weights, f32 math)."""
    B, T, D = x.shape
    hd = D // num_heads
    qkv = x @ qkv_w.T                                                   # (B,T,3D)
    qkv = qkv.reshape(B, T, 3, num_heads, hd).transpose(2, 0, 3, 1, 4)
    q, k, v = qkv[0], qkv[1], qkv[2]                                    # (B,H,T,hd)
    s = jnp.einsum("bhqd,bhkd->bhqk", q, k) / jnp.sqrt(jnp.float32(hd))
    attn = jax.nn.softmax(s, axis=-1)
    w = jnp.einsum("bhqk,bhkd->bhqd", attn, v)
    w = w.transpose(0, 2, 1, 3).reshape(B, T, D)
    out = w @ proj_w.T + proj_b
    return out, attn


# ----------------------------------- main --------------------------------------

if __name__ == "__main__":
    B, T, D, H = 2, 8, 32, 4   # batch=2, n_tokens=8, embed_dim=32, num_heads=4

    key = jax.random.PRNGKey(0)
    kx, kq, kp, kb = jax.random.split(key, 4)
    x = jax.random.normal(kx, (B, T, D), jnp.float32)
    # torch nn.Linear layout: weight is (out_features, in_features)
    qkv_w = jax.random.normal(kq, (3 * D, D), jnp.float32) * 0.05
    proj_w = jax.random.normal(kp, (D, D), jnp.float32) * 0.05
    proj_b = jax.random.normal(kb, (D,), jnp.float32) * 0.05

    # One-time weight prep: transpose, fold 1/sqrt(hd), cast bf16, reshape bias.
    wqkv, wproj, bproj = prepare_weights(qkv_w, proj_w, proj_b, H)

    out, attn = mha_forward_jit(x, wqkv, wproj, bproj, num_heads=H)
    jax.block_until_ready(out)
    jax.block_until_ready(attn)
    assert out.shape == (B, T, D)
    assert attn.shape == (B, H, T, T)

    # attn-free fast path (hot inference): no lane-sparse writeback at all
    out_only = mha_forward_jit(x, wqkv, wproj, bproj, num_heads=H, return_attn=False)
    jax.block_until_ready(out_only)

    ref_out, ref_attn = mha_reference(x, qkv_w, proj_w, proj_b, H)
    # bf16 MXU path + approx reciprocal -> slightly relaxed tolerances vs f32 ref
    assert jnp.allclose(attn, ref_attn, atol=1e-2, rtol=1e-2)
    assert jnp.allclose(out, ref_out, atol=2e-2, rtol=2e-2)
    assert jnp.allclose(out_only, out, atol=1e-5, rtol=1e-5)

    # TODO(synk): nn.Dropout layers (attn_drop / lin_drop) are p=0.0 identities
    # in the reference module, so they are intentionally omitted.

    print("KERNEL_OK")
</pallas_src>

<mosaic_0001>
module attributes {stable_mosaic.version = 11 : i64} {
  func.func @kernel(%arg0: i32, %arg1: memref<1x8x32xbf16, #tpu.memory_space<vmem>>, %arg2: memref<32x96xbf16, #tpu.memory_space<vmem>>, %arg3: memref<4x8x32xbf16, #tpu.memory_space<vmem>>, %arg4: memref<1x32xf32, #tpu.memory_space<vmem>>, %arg5: memref<1x8x32xf32, #tpu.memory_space<vmem>>, %arg6: memref<1x8x32xf32, #tpu.memory_space<vmem>>) attributes {dimension_semantics = [#tpu.dimension_semantics<parallel>], iteration_bounds = array<i64: 2>, scalar_prefetch = 0 : i64, scratch_operands = 0 : i64, tpu.core_type = #tpu.core_type<tc>, window_params = [{transform_indices = @transform_0, window_bounds = array<i64: 1, 8, 32>}, {pipeline_mode = #tpu.pipeline_mode<synchronous>, transform_indices = @transform_1, window_bounds = array<i64: 32, 96>}, {pipeline_mode = #tpu.pipeline_mode<synchronous>, transform_indices = @transform_2, window_bounds = array<i64: 4, 8, 32>}, {pipeline_mode = #tpu.pipeline_mode<synchronous>, transform_indices = @transform_3, window_bounds = array<i64: 1, 32>}, {transform_indices = @transform_4, window_bounds = array<i64: 1, 8, 32>}, {transform_indices = @transform_5, window_bounds = array<i64: 1, 8, 32>}]} {
    %c0 = arith.constant 0 : index
    %c0_0 = arith.constant 0 : index
    %c0_1 = arith.constant 0 : index
    %0 = vector.load %arg1[%c0, %c0_0, %c0_1] : memref<1x8x32xbf16, #tpu.memory_space<vmem>>, vector<1x8x32xbf16>
    %1 = vector.shape_cast %0 : vector<1x8x32xbf16> to vector<8x32xbf16>
    %c0_2 = arith.constant 0 : index
    %c0_3 = arith.constant 0 : index
    %2 = vector.load %arg2[%c0_2, %c0_3] : memref<32x96xbf16, #tpu.memory_space<vmem>>, vector<32x96xbf16>
    %cst = arith.constant dense<0.000000e+00> : vector<8x96xf32>
    %3 = tpu.matmul %1, %2, %cst {dimension_numbers = #tpu.dot_dimension_numbers<[1], [0], [0], [1], [0, 0, 1, 1], [], []>} : vector<8x32xbf16>, vector<32x96xbf16>, vector<8x96xf32> -> vector<8x96xf32>
    %4 = arith.truncf %3 : vector<8x96xf32> to vector<8x96xbf16>
    %5 = vector.shape_cast %4 : vector<8x96xbf16> to vector<1x8x96xbf16>
    %cst_4 = arith.constant 0.000000e+00 : f32
    %6 = vector.broadcast %cst_4 : f32 to vector<8x32xf32>
    %7 = vector.extract_strided_slice %5 {offsets = [0, 0, 0], sizes = [1, 8, 8], strides = [1, 1, 1]} : vector<1x8x96xbf16> to vector<1x8x8xbf16>
    %8 = vector.extract_strided_slice %5 {offsets = [0, 0, 32], sizes = [1, 8, 8], strides = [1, 1, 1]} : vector<1x8x96xbf16> to vector<1x8x8xbf16>
    %9 = vector.extract_strided_slice %5 {offsets = [0, 0, 64], sizes = [1, 8, 8], strides = [1, 1, 1]} : vector<1x8x96xbf16> to vector<1x8x8xbf16>
    "tpu.trace_start"() <{level = 10 : i32, message = "bqd,bkd->bqk"}> : () -> ()
    %cst_5 = arith.constant dense<0.000000e+00> : vector<1x8x8xf32>
    %10 = tpu.matmul %7, %8, %cst_5 {dimension_numbers = #tpu.dot_dimension_numbers<[2], [2], [1], [1], [0, 0, 0, 1, 1, 1], [0], [0]>} : vector<1x8x8xbf16>, vector<1x8x8xbf16>, vector<1x8x8xf32> -> vector<1x8x8xf32>
    "tpu.trace_stop"() : () -> ()
    %cst_6 = arith.constant dense<0xFF800000> : vector<1x8xf32>
    %11 = vector.multi_reduction <maximumf>, %10, %cst_6 [2] : vector<1x8x8xf32> to vector<1x8xf32>
    %12 = vector.shape_cast %11 : vector<1x8xf32> to vector<1x8x1xf32>
    %13 = vector.broadcast %12 : vector<1x8x1xf32> to vector<1x8x8xf32>
    %14 = arith.subf %10, %13 : vector<1x8x8xf32>
    %15 = math.exp %14 : vector<1x8x8xf32>
    %cst_7 = arith.constant dense<0.000000e+00> : vector<1x8xf32>
    %16 = vector.multi_reduction <add>, %15, %cst_7 [2] : vector<1x8x8xf32> to vector<1x8xf32>
    %17 = vector.shape_cast %16 : vector<1x8xf32> to vector<1x8x1xf32>
    %18 = tpu.reciprocal %17 {approx = true} : vector<1x8x1xf32> -> vector<1x8x1xf32>
    %19 = vector.broadcast %18 : vector<1x8x1xf32> to vector<1x8x8xf32>
    %20 = arith.mulf %15, %19 : vector<1x8x8xf32>
    %21 = arith.truncf %20 : vector<1x8x8xf32> to vector<1x8x8xbf16>
    "tpu.trace_start"() <{level = 10 : i32, message = "bqk,bkd->bqd"}> : () -> ()
    %cst_8 = arith.constant dense<0.000000e+00> : vector<1x8x8xf32>
    %22 = tpu.matmul %21, %9, %cst_8 {dimension_numbers = #tpu.dot_dimension_numbers<[2], [1], [1], [2], [0, 0, 0, 1, 1, 2], [0], [0]>} : vector<1x8x8xbf16>, vector<1x8x8xbf16>, vector<1x8x8xf32> -> vector<1x8x8xf32>
    "tpu.trace_stop"() : () -> ()
    %23 = vector.shape_cast %22 : vector<1x8x8xf32> to vector<8x8xf32>
    %24 = arith.truncf %23 : vector<8x8xf32> to vector<8x8xbf16>
    %c0_9 = arith.constant 0 : index
    %c0_10 = arith.constant 0 : index
    %c0_11 = arith.constant 0 : index
    %25 = vector.load %arg3[%c0_9, %c0_10, %c0_11] : memref<4x8x32xbf16, #tpu.memory_space<vmem>>, vector<1x8x32xbf16>
    %26 = vector.shape_cast %25 : vector<1x8x32xbf16> to vector<8x32xbf16>
    %cst_12 = arith.constant dense<0.000000e+00> : vector<8x32xf32>
    %27 = tpu.matmul %24, %26, %cst_12 {dimension_numbers = #tpu.dot_dimension_numbers<[1], [0], [0], [1], [0, 0, 1, 1], [], []>} : vector<8x8xbf16>, vector<8x32xbf16>, vector<8x32xf32> -> vector<8x32xf32>
    %28 = arith.addf %6, %27 : vector<8x32xf32>
    %29 = vector.extract_strided_slice %5 {offsets = [0, 0, 8], sizes = [1, 8, 8], strides = [1, 1, 1]} : vector<1x8x96xbf16> to vector<1x8x8xbf16>
    %30 = vector.extract_strided_slice %5 {offsets = [0, 0, 40], sizes = [1, 8, 8], strides = [1, 1, 1]} : vector<1x8x96xbf16> to vector<1x8x8xbf16>
    %31 = vector.extract_strided_slice %5 {offsets = [0, 0, 72], sizes = [1, 8, 8], strides = [1, 1, 1]} : vector<1x8x96xbf16> to vector<1x8x8xbf16>
    "tpu.trace_start"() <{level = 10 : i32, message = "bqd,bkd->bqk"}> : () -> ()
    %cst_13 = arith.constant dense<0.000000e+00> : vector<1x8x8xf32>
    %32 = tpu.matmul %29, %30, %cst_13 {dimension_numbers = #tpu.dot_dimension_numbers<[2], [2], [1], [1], [0, 0, 0, 1, 1, 1], [0], [0]>} : vector<1x8x8xbf16>, vector<1x8x8xbf16>, vector<1x8x8xf32> -> vector<1x8x8xf32>
    "tpu.trace_stop"() : () -> ()
    %cst_14 = arith.constant dense<0xFF800000> : vector<1x8xf32>
    %33 = vector.multi_reduction <maximumf>, %32, %cst_14 [2] : vector<1x8x8xf32> to vector<1x8xf32>
    %34 = vector.shape_cast %33 : vector<1x8xf32> to vector<1x8x1xf32>
    %35 = vector.broadcast %34 : vector<1x8x1xf32> to vector<1x8x8xf32>
    %36 = arith.subf %32, %35 : vector<1x8x8xf32>
    %37 = math.exp %36 : vector<1x8x8xf32>
    %cst_15 = arith.constant dense<0.000000e+00> : vector<1x8xf32>
    %38 = vector.multi_reduction <add>, %37, %cst_15 [2] : vector<1x8x8xf32> to vector<1x8xf32>
    %39 = vector.shape_cast %38 : vector<1x8xf32> to vector<1x8x1xf32>
    %40 = tpu.reciprocal %39 {approx = true} : vector<1x8x1xf32> -> vector<1x8x1xf32>
    %41 = vector.broadcast %40 : vector<1x8x1xf32> to vector<1x8x8xf32>
    %42 = arith.mulf %37, %41 : vector<1x8x8xf32>
    %43 = arith.truncf %42 : vector<1x8x8xf32> to vector<1x8x8xbf16>
    "tpu.trace_start"() <{level = 10 : i32, message = "bqk,bkd->bqd"}> : () -> ()
    %cst_16 = arith.constant dense<0.000000e+00> : vector<1x8x8xf32>
    %44 = tpu.matmul %43, %31, %cst_16 {dimension_numbers = #tpu.dot_dimension_numbers<[2], [1], [1], [2], [0, 0, 0, 1, 1, 2], [0], [0]>} : vector<1x8x8xbf16>, vector<1x8x8xbf16>, vector<1x8x8xf32> -> vector<1x8x8xf32>
    "tpu.trace_stop"() : () -> ()
    %45 = vector.shape_cast %44 : vector<1x8x8xf32> to vector<8x8xf32>
    %46 = arith.truncf %45 : vector<8x8xf32> to vector<8x8xbf16>
    %c1 = arith.constant 1 : index
    %c0_17 = arith.constant 0 : index
    %c0_18 = arith.constant 0 : index
    %47 = vector.load %arg3[%c1, %c0_17, %c0_18] : memref<4x8x32xbf16, #tpu.memory_space<vmem>>, vector<1x8x32xbf16>
    %48 = vector.shape_cast %47 : vector<1x8x32xbf16> to vector<8x32xbf16>
    %cst_19 = arith.constant dense<0.000000e+00> : vector<8x32xf32>
    %49 = tpu.matmul %46, %48, %cst_19 {dimension_numbers = #tpu.dot_dimension_numbers<[1], [0], [0], [1], [0, 0, 1, 1], [], []>} : vector<8x8xbf16>, vector<8x32xbf16>, vector<8x32xf32> -> vector<8x32xf32>
    %50 = arith.addf %28, %49 : vector<8x32xf32>
    %51 = vector.extract_strided_slice %5 {offsets = [0, 0, 16], sizes = [1, 8, 8], strides = [1, 1, 1]} : vector<1x8x96xbf16> to vector<1x8x8xbf16>
    %52 = vector.extract_strided_slice %5 {offsets = [0, 0, 48], sizes = [1, 8, 8], strides = [1, 1, 1]} : vector<1x8x96xbf16> to vector<1x8x8xbf16>
    %53 = vector.extract_strided_slice %5 {offsets = [0, 0, 80], sizes = [1, 8, 8], strides = [1, 1, 1]} : vector<1x8x96xbf16> to vector<1x8x8xbf16>
    "tpu.trace_start"() <{level = 10 : i32, message = "bqd,bkd->bqk"}> : () -> ()
    %cst_20 = arith.constant dense<0.000000e+00> : vector<1x8x8xf32>
    %54 = tpu.matmul %51, %52, %cst_20 {dimension_numbers = #tpu.dot_dimension_numbers<[2], [2], [1], [1], [0, 0, 0, 1, 1, 1], [0], [0]>} : vector<1x8x8xbf16>, vector<1x8x8xbf16>, vector<1x8x8xf32> -> vector<1x8x8xf32>
    "tpu.trace_stop"() : () -> ()
    %cst_21 = arith.constant dense<0xFF800000> : vector<1x8xf32>
    %55 = vector.multi_reduction <maximumf>, %54, %cst_21 [2] : vector<1x8x8xf32> to vector<1x8xf32>
    %56 = vector.shape_cast %55 : vector<1x8xf32> to vector<1x8x1xf32>
    %57 = vector.broadcast %56 : vector<1x8x1xf32> to vector<1x8x8xf32>
    %58 = arith.subf %54, %57 : vector<1x8x8xf32>
    %59 = math.exp %58 : vector<1x8x8xf32>
    %cst_22 = arith.constant dense<0.000000e+00> : vector<1x8xf32>
    %60 = vector.multi_reduction <add>, %59, %cst_22 [2] : vector<1x8x8xf32> to vector<1x8xf32>
    %61 = vector.shape_cast %60 : vector<1x8xf32> to vector<1x8x1xf32>
    %62 = tpu.reciprocal %61 {approx = true} : vector<1x8x1xf32> -> vector<1x8x1xf32>
    %63 = vector.broadcast %62 : vector<1x8x1xf32> to vector<1x8x8xf32>
    %64 = arith.mulf %59, %63 : vector<1x8x8xf32>
    %65 = arith.truncf %64 : vector<1x8x8xf32> to vector<1x8x8xbf16>
    "tpu.trace_start"() <{level = 10 : i32, message = "bqk,bkd->bqd"}> : () -> ()
    %cst_23 = arith.constant dense<0.000000e+00> : vector<1x8x8xf32>
    %66 = tpu.matmul %65, %53, %cst_23 {dimension_numbers = #tpu.dot_dimension_numbers<[2], [1], [1], [2], [0, 0, 0, 1, 1, 2], [0], [0]>} : vector<1x8x8xbf16>, vector<1x8x8xbf16>, vector<1x8x8xf32> -> vector<1x8x8xf32>
    "tpu.trace_stop"() : () -> ()
    %67 = vector.shape_cast %66 : vector<1x8x8xf32> to vector<8x8xf32>
    %68 = arith.truncf %67 : vector<8x8xf32> to vector<8x8xbf16>
    %c2 = arith.constant 2 : index
    %c0_24 = arith.constant 0 : index
    %c0_25 = arith.constant 0 : index
    %69 = vector.load %arg3[%c2, %c0_24, %c0_25] : memref<4x8x32xbf16, #tpu.memory_space<vmem>>, vector<1x8x32xbf16>
    %70 = vector.shape_cast %69 : vector<1x8x32xbf16> to vector<8x32xbf16>
    %cst_26 = arith.constant dense<0.000000e+00> : vector<8x32xf32>
    %71 = tpu.matmul %68, %70, %cst_26 {dimension_numbers = #tpu.dot_dimension_numbers<[1], [0], [0], [1], [0, 0, 1, 1], [], []>} : vector<8x8xbf16>, vector<8x32xbf16>, vector<8x32xf32> -> vector<8x32xf32>
    %72 = arith.addf %50, %71 : vector<8x32xf32>
    %73 = vector.extract_strided_slice %5 {offsets = [0, 0, 24], sizes = [1, 8, 8], strides = [1, 1, 1]} : vector<1x8x96xbf16> to vector<1x8x8xbf16>
    %74 = vector.extract_strided_slice %5 {offsets = [0, 0, 56], sizes = [1, 8, 8], strides = [1, 1, 1]} : vector<1x8x96xbf16> to vector<1x8x8xbf16>
    %75 = vector.extract_strided_slice %5 {offsets = [0, 0, 88], sizes = [1, 8, 8], strides = [1, 1, 1]} : vector<1x8x96xbf16> to vector<1x8x8xbf16>
    "tpu.trace_start"() <{level = 10 : i32, message = "bqd,bkd->bqk"}> : () -> ()
    %cst_27 = arith.constant dense<0.000000e+00> : vector<1x8x8xf32>
    %76 = tpu.matmul %73, %74, %cst_27 {dimension_numbers = #tpu.dot_dimension_numbers<[2], [2], [1], [1], [0, 0, 0, 1, 1, 1], [0], [0]>} : vector<1x8x8xbf16>, vector<1x8x8xbf16>, vector<1x8x8xf32> -> vector<1x8x8xf32>
    "tpu.trace_stop"() : () -> ()
    %cst_28 = arith.constant dense<0xFF800000> : vector<1x8xf32>
    %77 = vector.multi_reduction <maximumf>, %76, %cst_28 [2] : vector<1x8x8xf32> to vector<1x8xf32>
    %78 = vector.shape_cast %77 : vector<1x8xf32> to vector<1x8x1xf32>
    %79 = vector.broadcast %78 : vector<1x8x1xf32> to vector<1x8x8xf32>
    %80 = arith.subf %76, %79 : vector<1x8x8xf32>
    %81 = math.exp %80 : vector<1x8x8xf32>
    %cst_29 = arith.constant dense<0.000000e+00> : vector<1x8xf32>
    %82 = vector.multi_reduction <add>, %81, %cst_29 [2] : vector<1x8x8xf32> to vector<1x8xf32>
    %83 = vector.shape_cast %82 : vector<1x8xf32> to vector<1x8x1xf32>
    %84 = tpu.reciprocal %83 {approx = true} : vector<1x8x1xf32> -> vector<1x8x1xf32>
    %85 = vector.broadcast %84 : vector<1x8x1xf32> to vector<1x8x8xf32>
    %86 = arith.mulf %81, %85 : vector<1x8x8xf32>
    %87 = arith.truncf %86 : vector<1x8x8xf32> to vector<1x8x8xbf16>
    "tpu.trace_start"() <{level = 10 : i32, message = "bqk,bkd->bqd"}> : () -> ()
    %cst_30 = arith.constant dense<0.000000e+00> : vector<1x8x8xf32>
    %88 = tpu.matmul %87, %75, %cst_30 {dimension_numbers = #tpu.dot_dimension_numbers<[2], [1], [1], [2], [0, 0, 0, 1, 1, 2], [0], [0]>} : vector<1x8x8xbf16>, vector<1x8x8xbf16>, vector<1x8x8xf32> -> vector<1x8x8xf32>
    "tpu.trace_stop"() : () -> ()
    %89 = vector.shape_cast %88 : vector<1x8x8xf32> to vector<8x8xf32>
    %90 = arith.truncf %89 : vector<8x8xf32> to vector<8x8xbf16>
    %c3 = arith.constant 3 : index
    %c0_31 = arith.constant 0 : index
    %c0_32 = arith.constant 0 : index
    %91 = vector.load %arg3[%c3, %c0_31, %c0_32] : memref<4x8x32xbf16, #tpu.memory_space<vmem>>, vector<1x8x32xbf16>
    %92 = vector.shape_cast %91 : vector<1x8x32xbf16> to vector<8x32xbf16>
    %cst_33 = arith.constant dense<0.000000e+00> : vector<8x32xf32>
    %93 = tpu.matmul %90, %92, %cst_33 {dimension_numbers = #tpu.dot_dimension_numbers<[1], [0], [0], [1], [0, 0, 1, 1], [], []>} : vector<8x8xbf16>, vector<8x32xbf16>, vector<8x32xf32> -> vector<8x32xf32>
    %94 = arith.addf %72, %93 : vector<8x32xf32>
    %c0_34 = arith.constant 0 : index
    %c0_35 = arith.constant 0 : index
    %95 = vector.load %arg4[%c0_34, %c0_35] : memref<1x32xf32, #tpu.memory_space<vmem>>, vector<1x32xf32>
    %96 = vector.broadcast %95 : vector<1x32xf32> to vector<8x32xf32>
    %97 = arith.addf %94, %96 : vector<8x32xf32>
    %98 = vector.shape_cast %97 : vector<8x32xf32> to vector<1x8x32xf32>
    %c0_36 = arith.constant 0 : index
    %c0_37 = arith.constant 0 : index
    %c0_38 = arith.constant 0 : index
    %99 = vector.load %arg5[%c0_36, %c0_37, %c0_38] : memref<1x8x32xf32, #tpu.memory_space<vmem>>, vector<1x8x32xf32>
    tpu.vector_store %arg5[%c0_36, %c0_37, %c0_38], %98 {strides = array<i32>} : memref<1x8x32xf32, #tpu.memory_space<vmem>>, vector<1x8x32xf32>,
    %100 = tpu.concatenate %20, %42, %64, %86 in 2 : vector<1x8x8xf32>, vector<1x8x8xf32>, vector<1x8x8xf32>, vector<1x8x8xf32> -> vector<1x8x32xf32>
    %c0_39 = arith.constant 0 : index
    %c0_40 = arith.constant 0 : index
    %c0_41 = arith.constant 0 : index
    %101 = vector.load %arg6[%c0_39, %c0_40, %c0_41] : memref<1x8x32xf32, #tpu.memory_space<vmem>>, vector<1x8x32xf32>
    tpu.vector_store %arg6[%c0_39, %c0_40, %c0_41], %100 {strides = array<i32>} : memref<1x8x32xf32, #tpu.memory_space<vmem>>, vector<1x8x32xf32>,
    return
  }
  func.func @transform_0(%arg0: i32) -> (i32, i32, i32) {
    %c0_i32 = arith.constant 0 : i32
    %c0_i32_0 = arith.constant 0 : i32
    %c0_i32_1 = arith.constant 0 : i32
    return %arg0, %c0_i32, %c0_i32_0 : i32, i32, i32
  }
  func.func @transform_1(%arg0: i32) -> (i32, i32) {
    %c0_i32 = arith.constant 0 : i32
    %c0_i32_0 = arith.constant 0 : i32
    %c0_i32_1 = arith.constant 0 : i32
    return %c0_i32, %c0_i32_0 : i32, i32
  }
  func.func @transform_2(%arg0: i32) -> (i32, i32, i32) {
    %c0_i32 = arith.constant 0 : i32
    %c0_i32_0 = arith.constant 0 : i32
    %c0_i32_1 = arith.constant 0 : i32
    %c0_i32_2 = arith.constant 0 : i32
    return %c0_i32, %c0_i32_0, %c0_i32_1 : i32, i32, i32
  }
  func.func @transform_3(%arg0: i32) -> (i32, i32) {
    %c0_i32 = arith.constant 0 : i32
    %c0_i32_0 = arith.constant 0 : i32
    %c0_i32_1 = arith.constant 0 : i32
    return %c0_i32, %c0_i32_0 : i32, i32
  }
  func.func @transform_4(%arg0: i32) -> (i32, i32, i32) {
    %c0_i32 = arith.constant 0 : i32
    %c0_i32_0 = arith.constant 0 : i32
    %c0_i32_1 = arith.constant 0 : i32
    return %arg0, %c0_i32, %c0_i32_0 : i32, i32, i32
  }
  func.func @transform_5(%arg0: i32) -> (i32, i32, i32) {
    %c0_i32 = arith.constant 0 : i32
    %c0_i32_0 = arith.constant 0 : i32
    %c0_i32_1 = arith.constant 0 : i32
    return %arg0, %c0_i32, %c0_i32_0 : i32, i32, i32
  }
}

</mosaic_0001>

<bundles_post_ra>
// kernel: mha_forward.1
= control target key start
LH: loop header
LB: loop body
LE: loop exit
PB: predicated region body
PF: predicated region fallthrough
CT: control target
= control target key end

     0   :  { %11 = vsyncpa [#allocation3], 0  ;;  %s1712_s0 = inlined_call_operand.vmem [shape: bf16[2,8,32], index: 0, kind: input, shape index: {}]   ;;  %s1713_s1 = inlined_call_operand.vmem [shape: bf16[32,96], index: 1, kind: input, shape index: {}]   ;;  %s1714_s2 = inlined_call_operand.hbm [shape: bf16[4,8,32], index: 2, kind: input, shape index: {}]   ;;  %s1715_s3 = inlined_call_operand.vmem [shape: f32[1,32], index: 3, kind: input, shape index: {}]   ;;  %s1716_s4 = inlined_call_operand.hbm [shape: f32[2,8,32], index: 4, kind: output, shape index: {0}]   ;;  %s1717_s5 = inlined_call_operand.vmem [shape: f32[2,8,32], index: 5, kind: output, shape index: {1}]  }
   0x1   :  { %12 = vsyncpa [#allocation4], 0 }
   0x2   :  { %14 = vsyncpa [#allocation4 + $0x1], 0  ;;  %s1458_s18 = smov 0   ;;  %s1460_s19 = smov 0  }
   0x3   :  { %s1462_s20 = smov 0   ;;  %s1464_s21 = smov 0  }
   0x4 LB: > { %s1479_s22 = sadd.s32 4294967295, %s1406_s21   ;;  %s1090_s23 = sadd.s32 4294967294, %s1406_s21   ;;  %s1406_s21 = sphi %s1464_s21, %s1733_s21   ;;  %s1402_s20 = sphi %s1462_s20, %s1732_s20   ;;  %s1398_s19 = sphi %s1460_s19, %s1731_s19   ;;  %s1394_s18 = sphi %s1458_s18, %s1730_s18  }
   0x5   : > { %s1483_s24 = sadd.s32 1, %s1406_s21   ;;  %s116_s25 = sadd.s32 1, %s1402_s20 }
   0x6   : > { %s113_s26 = ssub.s32 %s1406_s21, %s1483_s24  ;;  %p126_p0 = scmp.ne.s32.totalorder %s1402_s20, %s1398_s19 }
   0x7   : > { %p114_p1 = scmp.eq.s32.totalorder %s113_s26, 0  ;;  %p127_p2 = scmp.eq.s32.totalorder %s1479_s22, 1 }
   0x8   : > { %p132_p3 = scmp.ne.s32.totalorder %s1398_s19, %s1394_s18  ;;  %p133_p4 = scmp.eq.s32.totalorder %s1090_s23, 1 }
   0x9   : > { %s1494_s27 = scalar_select %p114_p1, %s1402_s20, %s116_s25  }
   0xa   : > { %p1496_p5 = por %p127_p2, %p126_p0  ;;  %p1500_p6 = por %p133_p4, %p132_p3 }
   0xb   : > { %p1091_p7 = scmp.ge.s32.totalorder %s1406_s21, 1  ;;  %p166_p8 = scmp.lt.s32.totalorder %s1406_s21, 3 }
   0xc   : > { %s1721_s28 = scalar_select %p1496_p5, 1, 0 }
   0xd   : > { %s1722_s29 = scalar_select %p1500_p6, 1, 0 }
   0xe   : > { %p1718_p9 = scmp.eq.s32.totalorder %s1479_s22, 0  ;;  %p1507_p10 = pnand %p1091_p7, %p166_p8 }
   0xf   : > { %s1408_s6 = smov [#allocation2]   ;;  %s1312_s11 = scalar_lea.hbm %s1714_s2, 256 }
  0x10   : > { %s1723_s30 = scalar_select %p1507_p10, 1, 0 }
  0x11   : > { %s181_s7 = sshll.u32 %s1408_s6, 4  ;;  %p1232_p11 = pneg %p1507_p10  ;;  %s182_s7 = int_to_ptr.vmem [resolvable:$true] %s181_s7 }
  0x12   : > { %p1313_p13 = scmp.ne.s32.totalorder %s1714_s2, %s1312_s11  ;;  %p1319_p3 = scmp.lt.u32.totalorder %s1312_s11, %s1714_s2 }
  0x13   : > { %p1515_p12 = pnand %p1718_p9, %p1232_p11 }
  0x15   : > { %p1314_p0 = pneg %p1515_p12 }
  0x17   : > { %p1315_p1 = pnand %p1314_p0, %p1313_p13 }
  0x19   : > { %p1316_p2 = pneg %p1315_p1 }
  0x1b   : > { %p1321_p4 = pnand %p1319_p3, %p1316_p2 }
  0x1d   : > { %1324 = shalt.err (!%p1321_p4)
}
  0x1e   : > { %s1325_s16 = scalar_lea.vmem %s182_s7, 256  ;;  %p1333_p9 = scmp.lt.s32.totalorder %s182_s7, %s182_s7 }
  0x1f   : > { %p1326_p7 = scmp.ne.s32.totalorder %s182_s7, %s1325_s16  ;;  %p1334_p6 = scmp.lt.s32.totalorder %s1325_s16, %s1325_s16 }
  0x21   : > { %p1328_p8 = pnand %p1326_p7, %p1314_p0  ;;  %p1335_p5 = por %p1334_p6, %p1333_p9 }
  0x23   : > { %p1329_p11 = pneg %p1328_p8 }
  0x25   : > { %p1336_p10 = pnand %p1335_p5, %p1329_p11 }
  0x27   : > { %1339 = shalt.err (!%p1336_p10)
}
  0x28   : > { %s1409_s17 = smov 64   ;;  %s1410_s23 = smov 4  }
  0x29   : > { %1235 = dma.hbm_to_vmem [thread:$0]  (!%p1515_p12), %s1714_s2, 256, %s182_s7, [#allocation3], %s1409_s17, %s1409_s17, %s1410_s23  }
  0x2a   : > { %p1725_p13 = scmp.ne.s32.totalorder %s1723_s30, 0 }
  0x2b   : > { %p1726_p1 = scmp.eq.s32.totalorder (!%p1725_p13), %s1479_s22, 0 }
  0x2c   : > { %207 = sbr.rel (%p1725_p13) target bundleno = 2665 (0xa69), region = 36 }
  0x33   : > { %1385 = dma.done.wait (%p1726_p1), [#allocation3], 256   ;;  %p1727_p0 = pmov %p1726_p1 }
  0x34   : > { %p238_p5 = scmp.lt.s32.totalorder %s1479_s22, 1  ;;  %v1411_v0 = vmov 0.0   ;;  %vm1412_vm0 = vmmov 0   ;;  %v1294_v1 = vld [vmem:[%s1713_s1] sm:$0xff]   ;;  %v1295_v2 = vld [vmem:[%s1713_s1 + $0x8] sm:$0xff]   ;;  %vm264_vm1 = vcmask 261120  }
  0x35   : > { %1387 = vsyncadd (%p1727_p0), [#allocation3], 4294967040  ;;  %1146 = vmatprep.subr.bf16.mxu0 %v1411_v0  ;;  %1150 = vmatprep.mubr.msk.bf16.mxu0 %vm1412_vm0, %v1411_v0  ;;  %s1413_s14 = smov 120   ;;  %s1414_s15 = smov 96   ;;  %vm312_vm2 = vcmask 64512   ;;  %vm376_vm3 = vcmask 1043456  }
  0x36   : > { %1154 = vmatprep.subr.bf16.mxu1 %v1411_v0  ;;  %1156 = vmatprep.mubr.msk.bf16.mxu1 %vm1412_vm0, %v1411_v0  ;;  %s1549_s30 = scalar_select %p238_p5, %s1479_s22, 1  ;;  %v421_v46 = vld [vmem:[#allocation2] sm:$0xf]  ;;  %v534_v48 = vld [vmem:[#allocation2 + $0x4] sm:$0xf]  ;;  %vm969_vm4 = vcmask 130048  }
  0x37   : > { %1147 = vmatpush3.bf16.msra.mxu0 %v1294_v1  ;;  %s1415_s16 = smov 88   ;;  %s1416_s17 = smov 64   ;;  %v585_v47 = vsel %vm376_vm3, %v421_v46, 0  ;;  %v539_v49 = vsel %vm376_vm3, %v534_v48, 0  ;;  %vm971_vm5 = vcmask 195584  }
  0x38   : > { %s1097_s8 = sshll.u32 %s1549_s30, 2  ;;  %1148 = vmatprep.subr.bf16.mxu0 %v1411_v0  ;;  %s1417_s23 = smov 56  }
  0x39   : > { %s241_s13 = scalar_lea.vmem %s1712_s0, %s1097_s8  ;;  %s1418_s25 = smov 112  }
  0x3a   : > { %v247_v3 = vld [vmem:[%s241_s13] sm:$0xf]  ;;  %s1419_s26 = smov 80   ;;  %s1420_s6 = smov 72  }
  0x3b   : > { %1149 = vmatpush3.bf16.msra.mxu0 %v1295_v2  ;;  %s1421_s7 = smov 104   ;;  %s1422_s8 = smov 48  }
  0x3c   : > { %1160 = vmatprep.subr.bf16.mxu0 %v1411_v0  ;;  %s1423_s9 = smov 40   ;;  %s1424_s10 = smov 16  }
  0x3d   : > { %s1425_s11 = smov 8   ;;  %s1426_s12 = smov 24  }
  0x3e   : > { %1151 = vmatmul.mubr.msk.bf16.vlgmr.msra.gmra.mrb[0].mxu0 %vm264_vm1, %v247_v3  ;;  %s1098_s13 = sshll.u32 %s1549_s30, 3  ;;  %s229_s30 = sand.u32 1, %s1398_s19  }
  0x3f   : > { %1162 = vmatprep.mubr.msk.bf16.mxu0 %vm1412_vm0, %v1411_v0  ;;  %p1728_p9 = scmp.ne.s32.totalorder %s1721_s28, 0 }
 0x111   : > { %v302_v4 = vpop.f32.mrb[0].mxu0 }
 0x112   : > { %v1566_v5 = vpack.c.bf16 %v302_v4, %v302_v4  ;;  %v1152_v6 = vpop.f32.mrb[1].mxu0 }
 0x113   : > { %v305_v7 = vpop.f32.mrb[2].mxu0 }
 0x114   : > { %422 = vrot.lane.b32.xlu1 %v1566_v5, %s1413_s14  ;;  %310 = vrot.lane.b32.xlu0 %v1566_v5, %s1414_s15  ;;  %v1153_v8 = vpop.f32.mrb[3].mxu0 }
 0x118   : > { %424 = vrot.lane.b32.xlu0 %v1566_v5, %s1415_s16  ;;  %s245_s16 = scalar_lea.vmem %s1717_s5, %s1098_s13 }
 0x186   : > { %v311_v9 = vpop.permute.xlu0 %310  ;;  %v423_v13 = vpop.permute.xlu1 %422 }
 0x187   : > { %v317_v10 = vsel %vm312_vm2, %v311_v9, 0 }
 0x188   : > { %1155 = vmatpush3.bf16.xpose.msra.mxu1 %v317_v10 }
 0x189   : > { %1166 = vmatprep.subr.bf16.mxu1 %v1411_v0 }
 0x18a   : > { %v425_v11 = vpop.permute.xlu0 %424 }
 0x18b   : > { %v430_v12 = vsel %vm312_vm2, %v425_v11, 0 }
 0x18f   : > { %1157 = vmatmul.mubr.msk.bf16.vlgmr.msra.gmra.mrb[0].mxu1 %vm312_vm2, %v1566_v5 }
 0x190   : > { %1167 = vmatpush3.bf16.xpose.msra.mxu1 %v430_v12  ;;  %1168 = vmatprep.mubr.msk.bf16.mxu1 %vm1412_vm0, %v1411_v0 }
 0x191   : > { %1178 = vmatprep.subr.bf16.mxu1 %v1411_v0 }
 0x197   : > { %1169 = vmatmul.mubr.msk.bf16.vlgmr.msra.gmra.mrb[4].mxu1 %vm312_vm2, %v423_v13 }
 0x198   : > { %1180 = vmatprep.mubr.msk.bf16.mxu1 %vm1412_vm0, %v1411_v0  ;;  %1179 = vmatpush3.bf16.msra.mxu1 %v539_v49 }
 0x199   : > { %1190 = vmatprep.subr.bf16.mxu1 %v1411_v0 }
 0x262   : > { %v353_v14 = vpop.f32.mrb[0].mxu1 }
 0x263   : > { %v1158_v15 = vpop.f32.mrb[1].mxu1  ;;  %v359_v16 = vsel %vm312_vm2, %v353_v14, -inf }
 0x264   : > { %360 = vmax.xlane.f32.xlu1 %v359_v16  ;;  %v356_v17 = vpop.f32.mrb[2].mxu1 }
 0x265   : > { %v1159_v18 = vpop.f32.mrb[3].mxu1 }
 0x26a   : > { %v466_v19 = vpop.f32.mrb[4].mxu1 }
 0x26b   : > { %v1170_v20 = vpop.f32.mrb[5].mxu1  ;;  %v472_v21 = vsel %vm312_vm2, %v466_v19, -inf }
 0x26c   : > { %473 = vmax.xlane.f32.xlu0 %v472_v21  ;;  %v469_v22 = vpop.f32.mrb[6].mxu1 }
 0x26d   : > { %v1171_v23 = vpop.f32.mrb[7].mxu1 }
 0x2f1   : > { %v361_v24 = vpop.xlane.xlu1 %360 }
 0x2f2   : > { %v362_v25 = vsub.f32 %v353_v14, %v361_v24 }
 0x2f4   : > { %v363_v26 = vmul.f32 1.442695, %v362_v25 }
 0x2f6   : > { %1296 = vpow2.f32 %v363_v26 }
 0x2f9   : > { %v474_v27 = vpop.xlane.xlu0 %473 }
 0x2fa   : > { %v475_v28 = vsub.f32 %v466_v19, %v474_v27 }
 0x2fc   : > { %v476_v29 = vmul.f32 1.442695, %v475_v28 }
 0x2fe   : > { %1298 = vpow2.f32 %v476_v29  ;;  %v739_v29 = vld [vmem:[#allocation2 + $0x8] sm:$0xf] }
 0x300   : > { %v1297_v30 = vpop.eup %1296 }
 0x301   : > { %v365_v31 = vsel %vm312_vm2, %v1297_v30, 0.0 }
 0x302   : > { %366 = vadd.xlane.f32.xlu0 %v365_v31 }
 0x308   : > { %v1299_v32 = vpop.eup %1298 }
 0x309   : > { %v478_v33 = vsel %vm312_vm2, %v1299_v32, 0.0 }
 0x30a   : > { %479 = vadd.xlane.f32.xlu1 %v478_v33 }
 0x318   : > { %371 = vrot.lane.b32.xlu0 %v1566_v5, %s1416_s17  ;;  %s1096_s17 = sshll.u32 %s229_s30, 3 }
 0x31b   : > { %484 = vrot.lane.b32.xlu1 %v1566_v5, %s1417_s23 }
 0x31c   : > { %627 = vrot.lane.b32.xlu0 %v1566_v5, %s1418_s25 }
 0x31f   : > { %629 = vrot.lane.b32.xlu1 %v1566_v5, %s1419_s26  ;;  %s1116_s26 = sshll.u32 %s1479_s22, 7  ;;  %s975_s22 = scalar_lea.sflag [#allocation4], %s229_s30 }
 0x38f   : > { %v367_v34 = vpop.xlane.xlu0 %366 }
 0x390   : > { %1300 = vrcp.f32 %v367_v34 }
 0x393   : > { %v372_v35 = vpop.permute.xlu0 %371 }
 0x394   : > { %v378_v36 = vsel %vm376_vm3, %v372_v35, 0 }
 0x395   : > { %1161 = vmatpush3.bf16.msra.mxu0 %v378_v36 }
 0x396   : > { %1172 = vmatprep.subr.bf16.mxu0 %v1411_v0 }
 0x397   : > { %v480_v37 = vpop.xlane.xlu1 %479  ;;  %v628_v62 = vpop.permute.xlu0 %627 }
 0x398   : > { %1302 = vrcp.f32 %v480_v37 }
 0x39a   : > { %v1301_v38 = vpop.eup %1300 }
 0x39b   : > { %v1592_v39 = vmul.f32 %v1301_v38, %v1297_v30  ;;  %v485_v40 = vpop.permute.xlu1 %484  ;;  %v744_v30 = vsel %vm376_vm3, %v739_v29, 0 }
 0x39c   : > { %v490_v42 = vsel %vm376_vm3, %v485_v40, 0 }
 0x39d   : > { %v370_v41 = vpack.c.bf16 %v1592_v39, %v1592_v39 }
 0x39f   : > { %1163 = vmatmul.mubr.msk.bf16.vlgmr.msra.gmra.mrb[4].mxu0 %vm312_vm2, %v370_v41  ;;  %v630_v55 = vpop.permute.xlu1 %629 }
 0x3a0   : > { %1173 = vmatpush3.bf16.msra.mxu0 %v490_v42  ;;  %1174 = vmatprep.mubr.msk.bf16.mxu0 %vm1412_vm0, %v1411_v0  ;;  %v635_v60 = vsel %vm312_vm2, %v630_v55, 0 }
 0x3a1   : > { %1184 = vmatprep.subr.bf16.mxu0 %v1411_v0 }
 0x3a2   : > { %v1303_v43 = vpop.eup %1302 }
 0x3a3   : > { %v1601_v44 = vmul.f32 %v1303_v43, %v1299_v32 }
 0x3a5   : > { %v483_v45 = vpack.c.bf16 %v1601_v44, %v1601_v44 }
 0x3a7   : > { %1175 = vmatmul.mubr.msk.bf16.vlgmr.msra.gmra.mrb[8].mxu0 %vm312_vm2, %v483_v45 }
 0x3a8   : > { %1186 = vmatprep.mubr.msk.bf16.mxu0 %vm1412_vm0, %v1411_v0  ;;  %1185 = vmatpush3.bf16.msra.mxu0 %v585_v47 }
 0x3a9   : > { %1196 = vmatprep.subr.bf16.mxu0 %v1411_v0 }
 0x472   : > { %v414_v50 = vpop.f32.mrb[4].mxu0 }
 0x473   : > { %v420_v51 = vpack.c.bf16 %v414_v50, %v414_v50  ;;  %v1164_v52 = vpop.f32.mrb[5].mxu0 }
 0x474   : > { %v417_v53 = vpop.f32.mrb[6].mxu0 }
 0x475   : > { %v1165_v54 = vpop.f32.mrb[7].mxu0  ;;  %1187 = vmatmul.mubr.msk.bf16.vlgmr.msra.gmra.mrb[12].mxu0 %vm312_vm2, %v420_v51 }
 0x476   : > { %1198 = vmatprep.mubr.msk.bf16.mxu0 %vm1412_vm0, %v1411_v0  ;;  %v899_v54 = vld [vmem:[#allocation2 + $0xc] sm:$0xf] }
 0x477   : > { %v904_v55 = vsel %vm376_vm3, %v899_v54, 0 }
 0x47a   : > { %v526_v56 = vpop.f32.mrb[8].mxu0 }
 0x47b   : > { %v532_v57 = vpack.c.bf16 %v526_v56, %v526_v56  ;;  %v1176_v58 = vpop.f32.mrb[9].mxu0 }
 0x47c   : > { %v529_v59 = vpop.f32.mrb[10].mxu0 }
 0x47d   : > { %v1177_v61 = vpop.f32.mrb[11].mxu0  ;;  %1181 = vmatmul.mubr.msk.bf16.vlgmr.msra.gmra.mrb[8].mxu1 %vm312_vm2, %v532_v57 }
 0x47e   : > { %1191 = vmatpush3.bf16.xpose.msra.mxu1 %v635_v60  ;;  %1192 = vmatprep.mubr.msk.bf16.mxu1 %vm1412_vm0, %v1411_v0 }
 0x47f   : > { %1202 = vmatprep.subr.bf16.mxu1 %v1411_v0 }
 0x485   : > { %1193 = vmatmul.mubr.msk.bf16.vlgmr.msra.gmra.mrb[12].mxu1 %vm312_vm2, %v628_v62 }
 0x486   : > { %1204 = vmatprep.mubr.msk.bf16.mxu1 %vm1412_vm0, %v1411_v0  ;;  %1203 = vmatpush3.bf16.msra.mxu1 %v744_v30 }
 0x487   : > { %1214 = vmatprep.subr.bf16.mxu1 %v1411_v0 }
 0x548   : > { %v621_v63 = vpop.f32.mrb[12].mxu0 }
 0x549   : > { %v1188_v1 = vpop.f32.mrb[13].mxu0 }
 0x54a   : > { %v624_v2 = vpop.f32.mrb[14].mxu0 }
 0x54b   : > { %v1189_v3 = vpop.f32.mrb[15].mxu0 }
 0x550   : > { %v575_v4 = vpop.f32.mrb[8].mxu1 }
 0x551   : > { %v1623_v6 = vadd.f32 %v621_v63, %v575_v4  ;;  %v1182_v7 = vpop.f32.mrb[9].mxu1 }
 0x552   : > { %v578_v8 = vpop.f32.mrb[10].mxu1  ;;  %v1114_v7 = vld [vmem:[%s1715_s3] ss:$0 sm:$0xff] }
 0x553   : > { %v1183_v9 = vpop.f32.mrb[11].mxu1 }
 0x558   : > { %v671_v10 = vpop.f32.mrb[12].mxu1 }
 0x559   : > { %v1194_v11 = vpop.f32.mrb[13].mxu1  ;;  %v677_v12 = vsel %vm312_vm2, %v671_v10, -inf }
 0x55a   : > { %678 = vmax.xlane.f32.xlu1 %v677_v12  ;;  %v674_v13 = vpop.f32.mrb[14].mxu1 }
 0x55b   : > { %v1195_v14 = vpop.f32.mrb[15].mxu1 }
 0x56b   : > { %789 = vrot.lane.b32.xlu1 %v1566_v5, %s1420_s6  ;;  %s231_s6 = scalar_lea.vmem [#allocation5], %s1096_s17 }
 0x56f   : > { %787 = vrot.lane.b32.xlu1 %v1566_v5, %s1421_s7  ;;  %s992_s7 = sshll.u32 %s231_s6, 4  ;;  %s1671_s7 = int_to_ptr.vmem [resolvable:$true] %s992_s7 }
 0x5e7   : > { %v679_v15 = vpop.xlane.xlu1 %678 }
 0x5e8   : > { %v680_v16 = vsub.f32 %v671_v10, %v679_v15 }
 0x5ea   : > { %v681_v17 = vmul.f32 1.442695, %v680_v16 }
 0x5eb   : > { %v790_v25 = vpop.permute.xlu1 %789 }
 0x5ec   : > { %1304 = vpow2.f32 %v681_v17  ;;  %v795_v27 = vsel %vm312_vm2, %v790_v25, 0 }
 0x5ef   : > { %v788_v28 = vpop.permute.xlu1 %787 }
 0x5f6   : > { %v1305_v18 = vpop.eup %1304 }
 0x5f7   : > { %v683_v19 = vsel %vm312_vm2, %v1305_v18, 0.0 }
 0x5f8   : > { %684 = vadd.xlane.f32.xlu0 %v683_v19 }
 0x60e   : > { %689 = vrot.lane.b32.xlu0 %v1566_v5, %s1422_s8 }
 0x685   : > { %v685_v20 = vpop.xlane.xlu0 %684 }
 0x686   : > { %1306 = vrcp.f32 %v685_v20 }
 0x689   : > { %v690_v21 = vpop.permute.xlu0 %689 }
 0x68a   : > { %v695_v22 = vsel %vm376_vm3, %v690_v21, 0 }
 0x68b   : > { %1197 = vmatpush3.bf16.msra.mxu0 %v695_v22 }
 0x68c   : > { %1208 = vmatprep.subr.bf16.mxu0 %v1411_v0 }
 0x690   : > { %v1307_v23 = vpop.eup %1306 }
 0x691   : > { %v687_v24 = vmul.f32 %v1307_v23, %v1305_v18 }
 0x693   : > { %v688_v26 = vpack.c.bf16 %v687_v24, %v687_v24 }
 0x695   : > { %1199 = vmatmul.mubr.msk.bf16.vlgmr.msra.gmra.mrb[16].mxu0 %vm312_vm2, %v688_v26 }
 0x696   : > { %1209 = vmatpush3.bf16.xpose.msra.mxu0 %v795_v27  ;;  %1210 = vmatprep.mubr.msk.bf16.mxu0 %vm1412_vm0, %v1411_v0 }
 0x697   : > { %1220 = vmatprep.subr.bf16.mxu0 %v1411_v0 }
 0x69d   : > { %1211 = vmatmul.mubr.msk.bf16.vlgmr.msra.gmra.mrb[20].mxu0 %vm312_vm2, %v788_v28 }
 0x69e   : > { %1222 = vmatprep.mubr.msk.bf16.mxu0 %vm1412_vm0, %v1411_v0  ;;  %1221 = vmatpush3.bf16.msra.mxu0 %v904_v55 }
 0x768   : > { %v731_v31 = vpop.f32.mrb[16].mxu0 }
 0x769   : > { %v737_v32 = vpack.c.bf16 %v731_v31, %v731_v31  ;;  %v1200_v33 = vpop.f32.mrb[17].mxu0 }
 0x76a   : > { %v734_v34 = vpop.f32.mrb[18].mxu0 }
 0x76b   : > { %v1201_v35 = vpop.f32.mrb[19].mxu0  ;;  %1205 = vmatmul.mubr.msk.bf16.vlgmr.msra.gmra.mrb[16].mxu1 %vm312_vm2, %v737_v32 }
 0x76c   : > { %1216 = vmatprep.mubr.msk.bf16.mxu1 %vm1412_vm0, %v1411_v0 }
 0x770   : > { %v831_v36 = vpop.f32.mrb[20].mxu0 }
 0x771   : > { %v1212_v37 = vpop.f32.mrb[21].mxu0  ;;  %v837_v38 = vsel %vm312_vm2, %v831_v36, -inf }
 0x772   : > { %838 = vmax.xlane.f32.xlu0 %v837_v38  ;;  %v834_v40 = vpop.f32.mrb[22].mxu0 }
 0x773   : > { %v1213_v41 = vpop.f32.mrb[23].mxu0 }
 0x788   : > { %849 = vrot.lane.b32.xlu0 %v1566_v5, %s1423_s9 }
 0x78c   : > { %961 = vrot.lane.b32.xlu0 %v687_v24, %s1424_s10  ;;  %s1669_s10 = scalar_lea.hbm %s1716_s4, %s1116_s26 }
 0x7ff   : > { %v839_v42 = vpop.xlane.xlu0 %838 }
 0x800   : > { %v840_v43 = vsub.f32 %v831_v36, %v839_v42 }
 0x802   : > { %v841_v45 = vmul.f32 1.442695, %v840_v43 }
 0x803   : > { %v850_v46 = vpop.permute.xlu0 %849 }
 0x804   : > { %1308 = vpow2.f32 %v841_v45  ;;  %v855_v47 = vsel %vm376_vm3, %v850_v46, 0 }
 0x805   : > { %1215 = vmatpush3.bf16.msra.mxu1 %v855_v47 }
 0x807   : > { %v962_v60 = vpop.permute.xlu0 %961 }
 0x80e   : > { %v1309_v0 = vpop.eup %1308 }
 0x80f   : > { %v843_v48 = vsel %vm312_vm2, %v1309_v0, 0.0 }
 0x810   : > { %844 = vadd.xlane.f32.xlu1 %v843_v48 }
 0x821   : > { %957 = vrot.lane.b32.xlu1 %v1601_v44, %s1425_s11  ;;  %s1340_s11 = scalar_lea.vmem %s1671_s7, 128 }
 0x822   : > { %p1341_p6 = scmp.ne.s32.totalorder %s1671_s7, %s1340_s11 }
 0x824   : > { %p1342_p10 = pnand %p1341_p6, %p1728_p9 }
 0x826   : > { %p1343_p12 = pneg %p1342_p10 }
 0x83e   : > { %v780_v49 = vpop.f32.mrb[16].mxu1 }
 0x83f   : > { %v786_v5 = vadd.f32 %v780_v49, %v1623_v6  ;;  %v1206_v50 = vpop.f32.mrb[17].mxu1 }
 0x840   : > { %v783_v51 = vpop.f32.mrb[18].mxu1 }
 0x841   : > { %v1207_v52 = vpop.f32.mrb[19].mxu1 }
 0x89d   : > { %v845_v53 = vpop.xlane.xlu1 %844 }
 0x89e   : > { %1310 = vrcp.f32 %v845_v53 }
 0x8a1   : > { %v958_v44 = vpop.permute.xlu1 %957 }
 0x8a2   : > { %v968_v59 = vsel %vm312_vm2, %v1592_v39, %v958_v44 }
 0x8a3   : > { %v970_v62 = vsel %vm969_vm4, %v968_v59, %v962_v60 }
 0x8a8   : > { %v1311_v56 = vpop.eup %1310 }
 0x8a9   : > { %v847_v57 = vmul.f32 %v1311_v56, %v1309_v0 }
 0x8ab   : > { %965 = vrot.lane.b32.xlu1 %v847_v57, %s1426_s12  ;;  %v848_v58 = vpack.c.bf16 %v847_v57, %v847_v57  ;;  %s1427_s12 = smov [#allocation5]  }
 0x8ac   : > { %s1344_s13 = sshll.u32 %s1427_s12, 4  ;;  %s1345_s13 = int_to_ptr.vmem [resolvable:$false] %s1344_s13 }
 0x8ad   : > { %1217 = vmatmul.mubr.msk.bf16.vlgmr.msra.gmra.mrb[20].mxu1 %vm312_vm2, %v848_v58  ;;  %s1346_s14 = scalar_lea.vmem %s1345_s13, 256  ;;  %p1347_p2 = scmp.lt.s32.totalorder %s1671_s7, %s1345_s13 }
 0x8ae   : > { %p1348_p3 = scmp.lt.s32.totalorder %s1346_s14, %s1340_s11 }
 0x8b0   : > { %p1349_p4 = por %p1348_p3, %p1347_p2 }
 0x8b2   : > { %p1350_p7 = pnand %p1349_p4, %p1343_p12 }
 0x91d   : > { %v966_v61 = vpop.permute.xlu1 %965 }
 0x91e   : > { %v972_v63 = vsel %vm971_vm5, %v970_v62, %v966_v61 }
 0x91f   : > { %973 = vst.msk [vmem:[%s245_s16] sm:$0xff] %vm264_vm1, %v972_v63 }
 0x980   : > { %v891_v1 = vpop.f32.mrb[20].mxu1 }
 0x981   : > { %v897_v2 = vpack.c.bf16 %v891_v1, %v891_v1  ;;  %v1218_v3 = vpop.f32.mrb[21].mxu1 }
 0x982   : > { %v894_v4 = vpop.f32.mrb[22].mxu1 }
 0x983   : > { %v1219_v6 = vpop.f32.mrb[23].mxu1  ;;  %1223 = vmatmul.mubr.msk.bf16.vlgmr.msra.gmra.mrb[24].mxu0 %vm312_vm2, %v897_v2 }
 0xa56   : > { %v940_v39 = vpop.f32.mrb[24].mxu0 }
 0xa57   : > { %v946_v8 = vadd.f32 %v940_v39, %v786_v5  ;;  %v1224_v9 = vpop.f32.mrb[25].mxu0 }
 0xa58   : > { %v943_v10 = vpop.f32.mrb[26].mxu0 }
 0xa59   : > { %v954_v11 = vadd.f32 %v1114_v7, %v946_v8  ;;  %v1225_v12 = vpop.f32.mrb[27].mxu0 }
 0xa5b   : > { %955 = vst.msk [vmem:[%s231_s6] sm:$0xff] %vm264_vm1, %v954_v11 }
 0xa5c   : > { %1353 = shalt.err (!%p1350_p7)
}
 0xa5d   : > { %s1354_s15 = scalar_lea.hbm %s1669_s10, 128  ;;  %s1358_s17 = scalar_lea.hbm %s1716_s4, 256 }
 0xa5e   : > { %p1355_p8 = scmp.ne.s32.totalorder %s1669_s10, %s1354_s15  ;;  %p1359_p1 = scmp.lt.u32.totalorder %s1669_s10, %s1716_s4 }
 0xa5f   : > { %p1360_p0 = scmp.lt.u32.totalorder %s1358_s17, %s1354_s15  ;;  %p1362_p6 = scmp.lt.u32.totalorder %s1354_s15, %s1669_s10 }
 0xa60   : > { %p1356_p11 = pnand %p1355_p8, %p1728_p9 }
 0xa61   : > { %p1361_p5 = por %p1360_p0, %p1359_p1 }
 0xa62   : > { %p1357_p13 = pneg %p1356_p11 }
 0xa63   : > { %p1363_p10 = por %p1362_p6, %p1361_p5 }
 0xa65   : > { %p1364_p12 = pnand %p1363_p10, %p1357_p13 }
 0xa67   : > { %1367 = shalt.err (!%p1364_p12)
}
 0xa68   : > { %1230 = dma.vmem_to_hbm [thread:$0]  (%p1728_p9), %s1671_s7, 128, %s1669_s10, %s975_s22  }
 0xa69 PF: > { %p1242_p2 = scmp.ge.s32.totalorder %s1406_s21, 2  ;;  %s1007_s26 = sand.u32 1, %s1394_s18  }
 0xa6a   : > { %p1729_p3 = scmp.ne.s32.totalorder %s1722_s29, 0  ;;  %s1008_s6 = scalar_lea.sflag [#allocation4], %s1007_s26 }
 0xa6c   : > { %p1237_p4 = pnand %p1242_p2, %p1729_p3 }
 0xa6e   : > { %1389 = dma.done.wait (!%p1237_p4), %s1008_s6, 128  }
 0xa6f   : > { %1391 = vsyncadd (!%p1237_p4), %s1008_s6, 4294967168  ;;  %p17_p7 = scmp.ge.s32.totalorder %s1483_s24, 4   ;;  %s1730_s18 = smov %s1398_s19 }
 0xa70   : > { %s1731_s19 = smov %s1402_s20  ;;  %s1732_s20 = smov %s1494_s27 }
 0xa71   : > { %s1733_s21 = smov %s1483_s24  ;;  %19 = sbr.rel (!%p17_p7) target bundleno = 4 (0x4), region = 91 }
 0xa78   :  { %1020 = vsyncpa [#allocation3], 1 }
 0xa79   :  { %1022 = vsyncpa [#allocation3 + $0x1], 1 }
 0xa7a   :  { %1023 = vsyncpa [#allocation4], 1 }
 0xa7b   :  { %1025 = vsyncpa [#allocation4 + $0x1], 1 }

</bundles_post_ra>
